<compile_context>
chip_gen: v7x
topology: tpu7x:2x2x1
jax: 0.10.0
libtpu: 0.0.40
codegen_flags: <defaults>
</compile_context>

<pallas_src>
import math
import functools

import jax
import jax.numpy as jnp
from jax.experimental import pallas as pl
from jax.experimental.pallas import tpu as pltpu


# ----------------------------------------------------------------------------
# Buffer construction (mirrors nn.Module.__init__, plain JAX glue)
# ----------------------------------------------------------------------------
def make_positional_encoding(d_model: int, max_len: int) -> jnp.ndarray:
    """pe[max_len, d_model] exactly as the PyTorch buffer (before unsqueeze)."""
    position = jnp.arange(0, max_len, dtype=jnp.float32)[:, None]          # [L, 1]
    div_term = jnp.exp(
        jnp.arange(0, d_model, 2, dtype=jnp.float32) * (-math.log(10000.0) / d_model)
    )                                                                       # [D/2]
    angles = position * div_term                                            # [L, D/2]
    pe = jnp.zeros((max_len, d_model), dtype=jnp.float32)
    pe = pe.at[:, 0::2].set(jnp.sin(angles))
    pe = pe.at[:, 1::2].set(jnp.cos(angles))
    return pe


# ----------------------------------------------------------------------------
# Pallas kernels
# ----------------------------------------------------------------------------
def _bcast_pe(pe_tile, batch):
    # pe_tile: (tile_s, D) -> (tile_s, batch*D), replicated along the lane dim.
    # Matches x flattened as x2d[s, b*D + d] = x[s, b, d].
    if batch == 1:
        return pe_tile
    return jnp.concatenate([pe_tile] * batch, axis=-1)


def _pe_add_kernel(x_ref, pe_ref, o_ref, *, batch):
    # x_ref/o_ref: (tile_s, B*D)   pe_ref: (tile_s, D)
    o_ref[...] = x_ref[...] + _bcast_pe(pe_ref[...], batch)


def _pe_add_dropout_kernel(x_ref, pe_ref, u_ref, o_ref, *, batch, p):
    # Training-mode inverted dropout.  u_ref holds uniform [0,1) f32 randoms
    # generated in the wrapper (portable across TPU and interpret mode).
    y = x_ref[...] + _bcast_pe(pe_ref[...], batch)
    keep = u_ref[...] >= jnp.float32(p)                 # drop iff u < p
    scale = jnp.float32(1.0 / (1.0 - p))
    o_ref[...] = jnp.where(keep, y * scale, jnp.float32(0.0)).astype(o_ref.dtype)


# ----------------------------------------------------------------------------
# Tile sizing
# ----------------------------------------------------------------------------
def _pick_tile_s(S, row_bytes, target_block_bytes):
    """Largest multiple-of-8 divisor of S whose (tile_s x row) block fits budget."""
    if S % 8 != 0:
        # TODO(synk): general ragged S needs padding or masked stores; for now
        # fall back to a single full-sequence block (always a legal BlockSpec).
        return S
    cap = max(8, target_block_bytes // max(row_bytes, 1))
    best = 8
    for t in range(8, S + 1, 8):
        if S % t == 0 and t <= cap:
            best = t
    return best


# ----------------------------------------------------------------------------
# Wrapper
# ----------------------------------------------------------------------------
def positional_encoding_forward(x, pe, *, dropout_p=0.1, training=False, seed=0,
                                target_block_bytes=4 << 20):
    """x: [seq_len, batch, d_model].  pe: [max_len, d_model].  Returns x's shape/dtype."""
    S, B, D = x.shape
    assert pe.shape[0] >= S and pe.shape[1] == D
    BD = B * D
    x2d = x.reshape(S, BD)                       # lane-dense layout, free reshape

    tile_s = _pick_tile_s(S, BD * x.dtype.itemsize, target_block_bytes)
    grid = (S // tile_s,)

    # pe block's second-minor dim must be a multiple of 8 or equal the full dim.
    pe_arg = pe if tile_s % 8 == 0 else pe[:S]

    x_spec = pl.BlockSpec((tile_s, BD), lambda i: (i, 0))
    pe_spec = pl.BlockSpec((tile_s, D), lambda i: (i, 0))
    out_spec = pl.BlockSpec((tile_s, BD), lambda i: (i, 0))
    out_shape = jax.ShapeDtypeStruct((S, BD), x.dtype)

    cparams = pltpu.CompilerParams(
        dimension_semantics=("parallel",),       # tiles independent on all paths
        vmem_limit_bytes=32 << 20,               # > v5e default, < v7x physical
    )

    if not training or dropout_p == 0.0:
        out2d = pl.pallas_call(
            functools.partial(_pe_add_kernel, batch=B),
            out_shape=out_shape,
            grid_spec=pltpu.PrefetchScalarGridSpec(
                num_scalar_prefetch=0,
                grid=grid,
                in_specs=[x_spec, pe_spec],
                out_specs=out_spec,
            ),
            compiler_params=cparams,
        )(x2d, pe_arg)
    else:
        # Uniform randoms generated here (fused by XLA); kernel fuses the
        # compare/select/scale with the PE add so x is only touched once.
        u = jax.random.uniform(jax.random.PRNGKey(seed), (S, BD), dtype=jnp.float32)
        u_spec = pl.BlockSpec((tile_s, BD), lambda i: (i, 0))
        out2d = pl.pallas_call(
            functools.partial(_pe_add_dropout_kernel, batch=B, p=float(dropout_p)),
            out_shape=out_shape,
            grid_spec=pltpu.PrefetchScalarGridSpec(
                num_scalar_prefetch=0,
                grid=grid,
                in_specs=[x_spec, pe_spec, u_spec],
                out_specs=out_spec,
            ),
            compiler_params=cparams,
        )(x2d, pe_arg, u)

    return out2d.reshape(S, B, D)


# ----------------------------------------------------------------------------
# Demo / self-check
# ----------------------------------------------------------------------------
if __name__ == "__main__":
    d_model = 512         # matches the module's d_model
    max_len = 64          # small stand-in for 5000
    seq_len = 8
    batch = 2
    p = 0.1

    pe = make_positional_encoding(d_model, max_len)

    key = jax.random.PRNGKey(0)
    x = jax.random.normal(key, (seq_len, batch, d_model), dtype=jnp.float32)

    # eval-mode forward (dropout = identity)
    out = jax.block_until_ready(positional_encoding_forward(x, pe, training=False))
    ref = x + pe[:seq_len][:, None, :]
    assert out.shape == (seq_len, batch, d_model)
    assert jnp.allclose(out, ref, atol=1e-6), "eval-mode mismatch vs reference"

    # training-mode forward (add + inverted dropout, fused in-kernel)
    out_train = jax.block_until_ready(
        positional_encoding_forward(x, pe, training=True, dropout_p=p, seed=0))
    assert out_train.shape == (seq_len, batch, d_model)
    # every element is either exactly 0 (dropped) or ref/(1-p) (kept)
    kept = out_train != 0.0
    assert jnp.allclose(jnp.where(kept, out_train, 0.0),
                        jnp.where(kept, ref / (1.0 - p), 0.0),
                        atol=1e-5), "training-mode kept values mismatch"
    keep_frac = jnp.mean(kept.astype(jnp.float32))
    assert 0.75 <= float(keep_frac) <= 1.0, "dropout keep fraction implausible"

    print("KERNEL_OK")
</pallas_src>

<mosaic_0001>
module attributes {stable_mosaic.version = 11 : i64} {
  func.func @_pe_add_kernel(%arg0: i32, %arg1: memref<8x1024xf32, #tpu.memory_space<vmem>>, %arg2: memref<8x512xf32, #tpu.memory_space<vmem>>, %arg3: memref<8x1024xf32, #tpu.memory_space<vmem>>) attributes {dimension_semantics = [#tpu.dimension_semantics<parallel>], iteration_bounds = array<i64: 1>, scalar_prefetch = 0 : i64, scratch_operands = 0 : i64, tpu.core_type = #tpu.core_type<tc>, window_params = [{transform_indices = @transform_0, window_bounds = array<i64: 8, 1024>}, {transform_indices = @transform_1, window_bounds = array<i64: 8, 512>}, {transform_indices = @transform_2, window_bounds = array<i64: 8, 1024>}]} {
    %c0 = arith.constant 0 : index
    %c0_0 = arith.constant 0 : index
    %0 = vector.load %arg1[%c0, %c0_0] : memref<8x1024xf32, #tpu.memory_space<vmem>>, vector<8x1024xf32>
    %c0_1 = arith.constant 0 : index
    %c0_2 = arith.constant 0 : index
    %1 = vector.load %arg2[%c0_1, %c0_2] : memref<8x512xf32, #tpu.memory_space<vmem>>, vector<8x512xf32>
    %2 = tpu.concatenate %1, %1 in 1 : vector<8x512xf32>, vector<8x512xf32> -> vector<8x1024xf32>
    %3 = arith.addf %0, %2 : vector<8x1024xf32>
    %c0_3 = arith.constant 0 : index
    %c0_4 = arith.constant 0 : index
    %4 = vector.load %arg3[%c0_3, %c0_4] : memref<8x1024xf32, #tpu.memory_space<vmem>>, vector<8x1024xf32>
    tpu.vector_store %arg3[%c0_3, %c0_4], %3 {strides = array<i32>} : memref<8x1024xf32, #tpu.memory_space<vmem>>, vector<8x1024xf32>,
    return
  }
  func.func @transform_0(%arg0: i32) -> (i32, i32) {
    %c0_i32 = arith.constant 0 : i32
    %c0_i32_0 = arith.constant 0 : i32
    return %arg0, %c0_i32 : i32, i32
  }
  func.func @transform_1(%arg0: i32) -> (i32, i32) {
    %c0_i32 = arith.constant 0 : i32
    %c0_i32_0 = arith.constant 0 : i32
    return %arg0, %c0_i32 : i32, i32
  }
  func.func @transform_2(%arg0: i32) -> (i32, i32) {
    %c0_i32 = arith.constant 0 : i32
    %c0_i32_0 = arith.constant 0 : i32
    return %arg0, %c0_i32 : i32, i32
  }
}

</mosaic_0001>

<bundles_post_ra>
// kernel: tpu_custom_call.1
= control target key start
LH: loop header
LB: loop body
LE: loop exit
PB: predicated region body
PF: predicated region fallthrough
CT: control target
= control target key end

     0   :  { %7 = vsyncpa [#allocation3], 0  ;;  %s219_s0 = inlined_call_operand.hbm [shape: f32[8,1024], index: 0, kind: input, shape index: {}]   ;;  %s220_s1 = inlined_call_operand.hbm [shape: f32[64,512], index: 1, kind: input, shape index: {}]   ;;  %s221_s2 = inlined_call_operand.hbm [shape: f32[8,1024], index: 2, kind: output, shape index: {}]  }
   0x1   :  { %8 = vsyncpa [#allocation6], 0 }
   0x2   :  { %9 = vsyncpa [#allocation4], 0  ;;  %s155_s9 = smov [#allocation2]   ;;  %s156_s11 = smov [#allocation5]  }
   0x3   :  { %s16_s10 = sshll.u32 %s155_s9, 4  ;;  %s26_s12 = sshll.u32 %s156_s11, 4  ;;  %s17_s10 = int_to_ptr.vmem [resolvable:$true] %s16_s10  ;;  %s173_s12 = int_to_ptr.vmem [resolvable:$true] %s26_s12 }
   0x4   :  { %s83_s15 = scalar_lea.hbm %s219_s0, 1024 }
   0x5   :  { %p84_p0 = scmp.ne.s32.totalorder %s219_s0, %s83_s15  ;;  %p87_p1 = scmp.lt.u32.totalorder %s83_s15, %s219_s0 }
   0x7   :  { %p89_p2 = pnand %p87_p1, %p84_p0 }
   0x9   :  { %92 = shalt.err (!%p89_p2)
}
   0xa   :  { %s93_s20 = scalar_lea.vmem %s17_s10, 1024  ;;  %p98_p4 = scmp.lt.s32.totalorder %s17_s10, %s17_s10 }
   0xb   :  { %p94_p3 = scmp.ne.s32.totalorder %s17_s10, %s93_s20  ;;  %p99_p5 = scmp.lt.s32.totalorder %s93_s20, %s93_s20 }
   0xd   :  { %p100_p6 = por %p99_p5, %p98_p4 }
   0xf   :  { %p101_p7 = pnand %p100_p6, %p94_p3 }
  0x11   :  { %104 = shalt.err (!%p101_p7)
}
  0x12   :  { %19 = dma.hbm_to_vmem [thread:$0]  %s219_s0, 1024, %s17_s10, [#allocation3]  }
  0x13   :  { %s105_s25 = scalar_lea.hbm %s220_s1, 512  ;;  %s107_s30 = scalar_lea.hbm %s220_s1, 4096 }
  0x14   :  { %p106_p8 = scmp.ne.s32.totalorder %s220_s1, %s105_s25  ;;  %p108_p9 = scmp.lt.u32.totalorder %s107_s30, %s105_s25 }
  0x15   :  { %p109_p10 = scmp.lt.u32.totalorder %s105_s25, %s220_s1 }
  0x17   :  { %p110_p11 = por %p109_p10, %p108_p9 }
  0x19   :  { %p111_p12 = pnand %p110_p11, %p106_p8 }
  0x1b   :  { %114 = shalt.err (!%p111_p12)
}
  0x1c   :  { %s115_s0 = scalar_lea.vmem %s173_s12, 512  ;;  %p120_p0 = scmp.lt.s32.totalorder %s173_s12, %s173_s12 }
  0x1d   :  { %p116_p13 = scmp.ne.s32.totalorder %s173_s12, %s115_s0  ;;  %p121_p1 = scmp.lt.s32.totalorder %s115_s0, %s115_s0 }
  0x1f   :  { %p122_p2 = por %p121_p1, %p120_p0 }
  0x21   :  { %p123_p3 = pnand %p122_p2, %p116_p13 }
  0x23   :  { %126 = shalt.err (!%p123_p3)
}
  0x24   :  { %29 = dma.hbm_to_vmem [thread:$0]  %s220_s1, 512, %s173_s12, [#allocation6]  }
  0x25   :  { %149 = dma.done.wait [#allocation3], 1024  }
  0x26   :  { %150 = vsyncadd [#allocation3], 4294966272 }
  0x27   :  { %151 = dma.done.wait [#allocation6], 512  }
  0x28   :  { %152 = vsyncadd [#allocation6], 4294966784  ;;  %v36_v0 = vld [vmem:[#allocation2] sm:$0xff]  ;;  %v37_v2 = vld [vmem:[#allocation2 + $0x8] sm:$0xff]  ;;  %s157_s7 = smov [#allocation7]  }
  0x29   :  { %v44_v1 = vld [vmem:[#allocation5] sm:$0xff]  ;;  %v45_v4 = vld [vmem:[#allocation5 + $0x8] sm:$0xff]  ;;  %v38_v5 = vld [vmem:[#allocation2 + $0x10] sm:$0xff]  ;;  %s70_s8 = sshll.u32 %s157_s7, 4  ;;  %s71_s8 = int_to_ptr.vmem [resolvable:$true] %s70_s8 }
  0x2a   :  { %v48_v3 = vadd.f32 %v44_v1, %v36_v0  ;;  %v46_v6 = vld [vmem:[#allocation5 + $0x10] sm:$0xff]  ;;  %v49_v7 = vadd.f32 %v45_v4, %v37_v2  ;;  %v39_v9 = vld [vmem:[#allocation2 + $0x18] sm:$0xff]  ;;  %v40_v11 = vld [vmem:[#allocation2 + $0x20] sm:$0xff]  ;;  %s127_s1 = scalar_lea.vmem %s71_s8, 1024  ;;  %p132_p5 = scmp.lt.s32.totalorder %s71_s8, %s71_s8 }
  0x2b   :  { %v50_v8 = vadd.f32 %v46_v6, %v38_v5  ;;  %v47_v10 = vld [vmem:[#allocation5 + $0x18] sm:$0xff]  ;;  %v52_v13 = vadd.f32 %v44_v1, %v40_v11  ;;  %v41_v14 = vld [vmem:[#allocation2 + $0x28] sm:$0xff]  ;;  %v42_v15 = vld [vmem:[#allocation2 + $0x30] sm:$0xff]  ;;  %p128_p4 = scmp.ne.s32.totalorder %s71_s8, %s127_s1  ;;  %p133_p6 = scmp.lt.s32.totalorder %s127_s1, %s127_s1 }
  0x2c   :  { %56 = vst [vmem:[#allocation7] sm:$0xff] %v48_v3  ;;  %v51_v12 = vadd.f32 %v47_v10, %v39_v9  ;;  %v43_v16 = vld [vmem:[#allocation2 + $0x38] sm:$0xff]  ;;  %57 = vst [vmem:[#allocation7 + $0x8] sm:$0xff] %v49_v7  ;;  %v53_v17 = vadd.f32 %v45_v4, %v41_v14  ;;  %v54_v18 = vadd.f32 %v46_v6, %v42_v15 }
  0x2d   :  { %58 = vst [vmem:[#allocation7 + $0x10] sm:$0xff] %v50_v8  ;;  %v55_v19 = vadd.f32 %v47_v10, %v43_v16  ;;  %60 = vst [vmem:[#allocation7 + $0x20] sm:$0xff] %v52_v13  ;;  %p134_p7 = por %p133_p6, %p132_p5 }
  0x2e   :  { %59 = vst [vmem:[#allocation7 + $0x18] sm:$0xff] %v51_v12  ;;  %61 = vst [vmem:[#allocation7 + $0x28] sm:$0xff] %v53_v17 }
  0x2f   :  { %62 = vst [vmem:[#allocation7 + $0x30] sm:$0xff] %v54_v18  ;;  %63 = vst [vmem:[#allocation7 + $0x38] sm:$0xff] %v55_v19  ;;  %p135_p8 = pnand %p134_p7, %p128_p4 }
  0x31   :  { %138 = shalt.err (!%p135_p8)
}
  0x32   :  { %s139_s11 = scalar_lea.hbm %s221_s2, 1024 }
  0x33   :  { %p140_p9 = scmp.ne.s32.totalorder %s221_s2, %s139_s11  ;;  %p143_p10 = scmp.lt.u32.totalorder %s139_s11, %s221_s2 }
  0x35   :  { %p145_p11 = pnand %p143_p10, %p140_p9 }
  0x37   :  { %148 = shalt.err (!%p145_p11)
}
  0x38   :  { %73 = dma.vmem_to_hbm [thread:$0]  %s71_s8, 1024, %s221_s2, [#allocation4]  }
  0x39   :  { %153 = dma.done.wait [#allocation4], 1024  }
  0x3a   :  { %154 = vsyncadd [#allocation4], 4294966272 }
  0x3b   :  { %77 = vsyncpa [#allocation3], 1 }
  0x3c   :  { %78 = vsyncpa [#allocation6], 1 }
  0x3d   :  { %79 = vsyncpa [#allocation4], 1 }

</bundles_post_ra>
